<compile_context>
chip_gen: v7x
topology: tpu7x:2x2x1
jax: 0.10.0
libtpu: 0.0.40
codegen_flags: <defaults>
</compile_context>

<pallas_src>
import functools

import jax
import jax.numpy as jnp
from jax.experimental import pallas as pl
from jax.experimental.pallas import tpu as pltpu

LANES = 128
TILE_BYTES_PER_INPUT = 4 * 1024 * 1024  # ~4 MiB per input per block


def _round_up(x, m):
    return ((x + m - 1) // m) * m


def _fold_partial(sq, tile_rows):
    """Fold a (tile_rows, 128) f32 block to an (8, 128) partial with vreg adds.

    For large tiles use a two-level fold: 8 independent accumulation chains
    (one vreg each), then a short 7-add combine. Avoids a single long serial
    vadd chain becoming the bottleneck on v7x.
    """
    if tile_rows >= 128 and tile_rows % 64 == 0:
        part = sq.reshape(tile_rows // 64, 8, 8, LANES).sum(axis=0)  # 8 chains
        return part.sum(axis=0)
    return sq.reshape(tile_rows // 8, 8, LANES).sum(axis=0)


def _mse_partial_kernel(p_ref, t_ref, o_ref, *, rows_true, tile_rows, need_mask):
    # Main path: purely element-wise streaming (cast to f32 in-kernel).
    d = p_ref[...].astype(jnp.float32) - t_ref[...].astype(jnp.float32)
    o_ref[...] = _fold_partial(d * d, tile_rows)

    if need_mask:
        # Only the final (ragged) block pays for iota/compare/select. The
        # unmasked result written above (which may contain garbage from the
        # pipeline's padded rows) is fully overwritten here.
        @pl.when(pl.program_id(0) == pl.num_programs(0) - 1)
        def _():
            row0 = pl.program_id(0) * tile_rows
            local_row = jax.lax.broadcasted_iota(jnp.int32, (tile_rows, LANES), 0)
            valid = (row0 + local_row) < rows_true
            dm = jnp.where(
                valid,
                p_ref[...].astype(jnp.float32) - t_ref[...].astype(jnp.float32),
                jnp.float32(0.0),
            )
            o_ref[...] = _fold_partial(dm * dm, tile_rows)


@jax.jit
def sigmoid_mae_loss(pred, target):
    """Equivalent to torch.nn.MSELoss()(pred, target): mean over all elements.

    Note: despite the module name, the reference forward applies no sigmoid
    and no |.| -- it is plain mean-squared-error, which is what we compute.
    """
    assert pred.shape == target.shape, "pred/target shapes must match"
    n_elems = pred.size

    p_flat = pred.reshape(-1)
    t_flat = target.reshape(-1)

    rows = n_elems // LANES
    n_main = rows * LANES
    rem = n_elems - n_main

    # Lane-ragged tail (< 128 elements): tiny plain-jnp sum, no full-array pad.
    if rem:
        pt = p_flat[n_main:].astype(jnp.float32)
        tt = t_flat[n_main:].astype(jnp.float32)
        tail_sum = jnp.sum((pt - tt) ** 2)
    else:
        tail_sum = jnp.float32(0.0)

    if rows == 0:
        # Whole input smaller than one lane row; nothing for the kernel to do.
        return (tail_sum / jnp.float32(n_elems)).astype(jnp.float32)

    p2d = (p_flat[:n_main] if rem else p_flat).reshape(rows, LANES)
    t2d = (t_flat[:n_main] if rem else t_flat).reshape(rows, LANES)

    # Dtype-aware tiling: keep each input block ~4 MiB and round rows to the
    # native sublane packing (8 for f32, 16 for bf16/f16, 32 for int8/fp8).
    itemsize_max = max(pred.dtype.itemsize, target.dtype.itemsize)
    itemsize_min = min(pred.dtype.itemsize, target.dtype.itemsize)
    sub = max(8, 8 * (4 // itemsize_min))
    max_tile_rows = max(
        sub, (TILE_BYTES_PER_INPUT // (LANES * itemsize_max)) // sub * sub
    )

    # Aim for >= 2 balanced blocks so v7x megacore can shard the grid axis.
    balanced_rows = _round_up(pl.cdiv(rows, 2), sub)
    tile_rows = max(sub, min(max_tile_rows, balanced_rows))
    num_blocks = pl.cdiv(rows, tile_rows)
    need_mask = (rows % tile_rows) != 0

    kernel = functools.partial(
        _mse_partial_kernel,
        rows_true=rows,
        tile_rows=tile_rows,
        need_mask=need_mask,
    )

    bytes_accessed = (
        n_main * (pred.dtype.itemsize + target.dtype.itemsize)
        + num_blocks * 8 * LANES * 4
    )

    partials = pl.pallas_call(
        kernel,
        out_shape=jax.ShapeDtypeStruct((num_blocks * 8, LANES), jnp.float32),
        grid_spec=pltpu.PrefetchScalarGridSpec(
            num_scalar_prefetch=0,
            grid=(num_blocks,),
            in_specs=[
                pl.BlockSpec((tile_rows, LANES), lambda i: (i, 0)),
                pl.BlockSpec((tile_rows, LANES), lambda i: (i, 0)),
            ],
            out_specs=pl.BlockSpec((8, LANES), lambda i: (i, 0)),
        ),
        compiler_params=pltpu.CompilerParams(
            # No cross-iteration carry -> megacore can shard the row loop.
            dimension_semantics=("parallel",),
            # 2 inputs x 2 buffers x 4 MiB = 16 MiB working set: raise the
            # scoped limit so v5e (16 MiB default) compiles cleanly too.
            vmem_limit_bytes=32 * 1024 * 1024,
        ),
        cost_estimate=pl.CostEstimate(
            flops=3 * n_main, transcendentals=0, bytes_accessed=bytes_accessed
        ),
    )(p2d, t2d)

    total = jnp.sum(partials) + tail_sum
    return (total / jnp.float32(n_elems)).astype(jnp.float32)


if __name__ == "__main__":
    key = jax.random.PRNGKey(0)
    k1, k2 = jax.random.split(key)
    # Small NCHW shapes: batch=2, channels=4, 16x16 spatial.
    pred = jax.random.normal(k1, (2, 4, 16, 16), dtype=jnp.float32)
    target = jax.random.normal(k2, (2, 4, 16, 16), dtype=jnp.float32)

    loss = sigmoid_mae_loss(pred, target)
    loss = jax.block_until_ready(loss)

    # Sanity check against plain-JAX reference (matches torch MSELoss 'mean').
    ref = jnp.mean((pred - target) ** 2)
    assert jnp.allclose(loss, ref, rtol=1e-5, atol=1e-6), (loss, ref)

    print("KERNEL_OK")
</pallas_src>

<mosaic_0001>
module attributes {stable_mosaic.version = 11 : i64} {
  func.func @_mse_partial_kernel(%arg0: i32, %arg1: memref<8x128xf32, #tpu.memory_space<vmem>>, %arg2: memref<8x128xf32, #tpu.memory_space<vmem>>, %arg3: memref<8x128xf32, #tpu.memory_space<vmem>>) attributes {dimension_semantics = [#tpu.dimension_semantics<parallel>], iteration_bounds = array<i64: 2>, scalar_prefetch = 0 : i64, scratch_operands = 0 : i64, tpu.core_type = #tpu.core_type<tc>, window_params = [{transform_indices = @transform_0, window_bounds = array<i64: 8, 128>}, {transform_indices = @transform_1, window_bounds = array<i64: 8, 128>}, {transform_indices = @transform_2, window_bounds = array<i64: 8, 128>}]} {
    %c0 = arith.constant 0 : index
    %c0_0 = arith.constant 0 : index
    %0 = vector.load %arg1[%c0, %c0_0] : memref<8x128xf32, #tpu.memory_space<vmem>>, vector<8x128xf32>
    %c0_1 = arith.constant 0 : index
    %c0_2 = arith.constant 0 : index
    %1 = vector.load %arg2[%c0_1, %c0_2] : memref<8x128xf32, #tpu.memory_space<vmem>>, vector<8x128xf32>
    %2 = arith.subf %0, %1 : vector<8x128xf32>
    %3 = arith.mulf %2, %2 : vector<8x128xf32>
    %4 = vector.shape_cast %3 : vector<8x128xf32> to vector<1x8x128xf32>
    %cst = arith.constant dense<0.000000e+00> : vector<8x128xf32>
    %5 = vector.multi_reduction <add>, %4, %cst [0] : vector<1x8x128xf32> to vector<8x128xf32>
    %c0_3 = arith.constant 0 : index
    %c0_4 = arith.constant 0 : index
    %6 = vector.load %arg3[%c0_3, %c0_4] : memref<8x128xf32, #tpu.memory_space<vmem>>, vector<8x128xf32>
    tpu.vector_store %arg3[%c0_3, %c0_4], %5 {strides = array<i32>} : memref<8x128xf32, #tpu.memory_space<vmem>>, vector<8x128xf32>,
    return
  }
  func.func @transform_0(%arg0: i32) -> (i32, i32) {
    %c0_i32 = arith.constant 0 : i32
    %c0_i32_0 = arith.constant 0 : i32
    return %arg0, %c0_i32 : i32, i32
  }
  func.func @transform_1(%arg0: i32) -> (i32, i32) {
    %c0_i32 = arith.constant 0 : i32
    %c0_i32_0 = arith.constant 0 : i32
    return %arg0, %c0_i32 : i32, i32
  }
  func.func @transform_2(%arg0: i32) -> (i32, i32) {
    %c0_i32 = arith.constant 0 : i32
    %c0_i32_0 = arith.constant 0 : i32
    return %arg0, %c0_i32 : i32, i32
  }
}

</mosaic_0001>

<bundles_post_ra>
// kernel: sigmoid_mae_loss.1
= control target key start
LH: loop header
LB: loop body
LE: loop exit
PB: predicated region body
PF: predicated region fallthrough
CT: control target
= control target key end

     0   :  { %s249_s9 = smov 0   ;;  %s277_s0 = inlined_call_operand.vmem [shape: f32[16,128], index: 0, kind: input, shape index: {}]   ;;  %s278_s1 = inlined_call_operand.vmem [shape: f32[16,128], index: 1, kind: input, shape index: {}]   ;;  %s279_s2 = inlined_call_operand.vmem [shape: f32[16,128], index: 2, kind: output, shape index: {}]  }
   0x1 LB: > { %s227_s10 = sadd.s32 4294967295, %s251_s9   ;;  %p231_p0 = scmp.ge.s32.totalorder %s251_s9, 1  ;;  %s251_s9 = sphi %s249_s9, %s12_s9  }
   0x2   : > { %p120_p1 = scmp.lt.s32.totalorder %s251_s9, 3 }
   0x4   : > { %p121_p2 = pnand %p231_p0, %p120_p1 }
   0x5   : > { %p144_p3 = scmp.lt.s32.totalorder (!%p121_p2), %s227_s10, 1 }
   0x6   : > { %124 = sbr.rel (%p121_p2) target bundleno = 23 (0x17), region = 28 }
   0xd   : > { %s281_s10 = smov (!%p144_p3, %s227_s10), 1 }
   0xe   : > { %s232_s11 = sshll.u32 %s281_s10, 3 }
   0xf   : > { %s147_s14 = scalar_lea.vmem %s277_s0, %s232_s11  ;;  %s151_s17 = scalar_lea.vmem %s278_s1, %s232_s11 }
  0x10   : > { %v156_v0 = vld [vmem:[%s147_s14] sm:$0xff]  ;;  %s155_s20 = scalar_lea.vmem %s279_s2, %s232_s11 }
  0x11   : > { %v157_v1 = vld [vmem:[%s151_s17] sm:$0xff] }
  0x12   : > { %v158_v2 = vsub.f32 %v156_v0, %v157_v1 }
  0x14   : > { %v159_v3 = vmul.f32 %v158_v2, %v158_v2 }
  0x16   : > { %161 = vst [vmem:[%s155_s20] sm:$0xff] %v159_v3 }
  0x17 PF: > { %s12_s9 = sadd.s32 1, %s251_s9  }
  0x18   : > { %p9_p4 = scmp.ge.s32.totalorder %s12_s9, 4  }
  0x1a   :  { %11 = sbr.rel (!%p9_p4) target bundleno = 1 (0x1), region = 61 }

</bundles_post_ra>
